<compile_context>
chip_gen: v7x
topology: tpu7x:2x2x1
jax: 0.10.0
libtpu: 0.0.40
codegen_flags: <defaults>
</compile_context>

<pallas_src>
import functools

import jax
import jax.numpy as jnp
import numpy as np
from jax import lax
from jax.experimental import pallas as pl
from jax.experimental.pallas import tpu as pltpu

_LN_EPS = 1e-5
_GELU_C = 0.7978845608028654  # sqrt(2/pi)


def _gelu_tanh(x):
    # TODO(synk): the module's custom GELU class is not shown in the source;
    # using the standard BERT-style tanh approximation.
    return 0.5 * x * (1.0 + jnp.tanh(_GELU_C * (x + 0.044715 * x * x * x)))


def _newton_recip(d):
    # approx reciprocal runs on the EUP slot; one VPU Newton step restores ~f32 accuracy.
    r = pl.reciprocal(d, approx=True)
    return r * (2.0 - d * r)


# ----------------------------- kernel ---------------------------------------


def _gcn_kernel(xh_ref, xl_ref, adj_ref, w_in_ref, w_out_ref,
                b_in_ref, b_out_ref, gamma_ref, beta_ref, o_ref,
                p_in_s, p_out_s, axw_s,
                *, bt, n, din, dout, graph_type, gcn_gate):
    # ---- adjacency matmuls (bf16 MXU, f32 accumulate) -> scratch ------------
    # X_aug columns: [0:din] = x, [din] = x@gw_in, [din+1] = x@gw_out, [din+2] = 1
    # TODO(synk): for very small N with bt > 1, packing the bt adjacencies into a
    # block-diagonal (bt*N, bt*N) tile would replace this unroll with one matmul
    # per direction; not implemented here.
    for b in range(bt):
        adj_b = adj_ref[b]                          # (N, N) bf16, exact 0/1
        xh_b = xh_ref[pl.ds(b * n, n), :]           # (N, Daug) bf16 hi limb
        xl_b = xl_ref[pl.ds(b * n, n), :]           # (N, Daug) bf16 lo limb

        # P_in = adj @ X_aug
        p_in = (jnp.dot(adj_b, xh_b, preferred_element_type=jnp.float32) +
                jnp.dot(adj_b, xl_b, preferred_element_type=jnp.float32))
        # P_out = adj^T @ X_aug  (transposed-LHS matmul, no transpose materialized)
        p_out = (lax.dot_general(adj_b, xh_b,
                                 dimension_numbers=(((0,), (0,)), ((), ())),
                                 preferred_element_type=jnp.float32) +
                 lax.dot_general(adj_b, xl_b,
                                 dimension_numbers=(((0,), (0,)), ((), ())),
                                 preferred_element_type=jnp.float32))

        p_in_s[pl.ds(b * n, n), :] = p_in
        p_out_s[pl.ds(b * n, n), :] = p_out

    # ---- full-block gate / fc / denominator ---------------------------------
    # reconstruct f32 x for the residual path from the hi/lo limbs (error ~2^-16 rel).
    x = xh_ref[:, :din].astype(jnp.float32) + xl_ref[:, :din].astype(jnp.float32)

    ax_in = p_in_s[:, :din]                         # (rows, Din)
    ax_out = p_out_s[:, :din]

    if gcn_gate:
        g_in = jax.nn.sigmoid(p_in_s[:, din:din + 1])         # adj   @ (x@gw_in)
        g_out = jax.nn.sigmoid(p_out_s[:, din + 1:din + 2])   # adj^T @ (x@gw_out)
        ax_in = ax_in * g_in          # gate biases are folded into the fused fc bias
        ax_out = ax_out * g_out

    # two dense fc matmuls (no zero-padded block-diagonal weight). The bias refs
    # already contain the doubled fc bias (fc(Ax)+fc(x)) and the folded gate bias.
    axw_in = jnp.dot(ax_in + x, w_in_ref[...],
                     preferred_element_type=jnp.float32) + b_in_ref[...]
    axw_out = jnp.dot(ax_out + x, w_out_ref[...],
                      preferred_element_type=jnp.float32) + b_out_ref[...]

    if graph_type == 'dependent':
        den_in = p_in_s[:, din + 2:din + 3] + 1.0    # adj   @ ones + 1
        den_out = p_out_s[:, din + 2:din + 3] + 1.0  # adj^T @ ones + 1
        axw_in = axw_in * _newton_recip(den_in)
        axw_out = axw_out * _newton_recip(den_out)

    # concat halves through a (rows, 2*Dout) scratch -> one LN/GELU pass, one store.
    axw_s[:, :dout] = axw_in
    axw_s[:, dout:] = axw_out
    axw = axw_s[...]

    mean = jnp.mean(axw, axis=-1, keepdims=True)
    centered = axw - mean
    var = jnp.mean(centered * centered, axis=-1, keepdims=True)
    normed = centered * lax.rsqrt(var + _LN_EPS) * gamma_ref[...] + beta_ref[...]
    o_ref[...] = _gelu_tanh(normed)


# ----------------------------- wrapper ---------------------------------------


def _vmem_estimate(bt, n, din, dout, daug):
    """Rough per-grid-step VMEM bytes (double-buffered pipelined tiles + scratch)."""
    rows = bt * n
    per_buf = rows * daug * 2 * 2 + bt * n * n * 2 + rows * 2 * dout * 4  # x hi+lo, adj, out
    resident = 2 * din * dout * 4 + 6 * 2 * dout * 4
    scratch = 2 * rows * daug * 4 + rows * 2 * dout * 4
    temps = 6 * rows * max(daug, 2 * dout) * 4
    return 2 * per_buf + resident + scratch + temps


def _pick_batch_block(B, n, din, dout, daug, vmem_budget, target_rows=512, max_bt=8):
    """Largest divisor of B that (a) leaves a grid >= 2 when possible, (b) keeps the
    row block near target_rows, and (c) fits the VMEM budget."""
    divs = [d for d in range(1, B + 1) if B % d == 0]
    cands = [d for d in divs if B // d >= 2] or divs   # prefer >=2 grid steps (dual TC)
    want = max(1, min(max_bt, -(-target_rows // n)))
    best = 1
    for d in cands:
        if d <= want and _vmem_estimate(d, n, din, dout, daug) <= vmem_budget:
            best = max(best, d)
    return best


def gcn_layer_forward(x, adj, params, *, graph_type='dependent', gcn_gate=True):
    B, N, Din = x.shape
    Dout = params['w_in'].shape[1]
    D2out = 2 * Dout

    # ---- pad N to a sublane-friendly multiple of 8 --------------------------
    # Zero rows/cols leave real-row results and denominators untouched; the padded
    # output rows are dropped at the end.
    Np = -(-N // 8) * 8
    if Np != N:
        x = jnp.pad(x, ((0, 0), (0, Np - N), (0, 0)))
        adj = jnp.pad(adj, ((0, 0), (0, Np - N), (0, Np - N)))

    # ---- host-side parameter fusion (tiny, once per call) -------------------
    w_in = params['w_in'].astype(jnp.float32)        # (Din, Dout), pre-transposed
    w_out = params['w_out'].astype(jnp.float32)
    b_in2 = 2.0 * params['b_in'].astype(jnp.float32)    # fc bias applied twice: fc(Ax)+fc(x)
    b_out2 = 2.0 * params['b_out'].astype(jnp.float32)
    if gcn_gate:
        # (Ax*g + gb + x) @ W == (Ax*g + x) @ W + gb * colsum(W): fold gb into bias.
        b_in2 = b_in2 + params['gb_in'][0, 0] * jnp.sum(w_in, axis=0, keepdims=True)
        b_out2 = b_out2 + params['gb_out'][0, 0] * jnp.sum(w_out, axis=0, keepdims=True)
        gw_in = params['gw_in'].astype(jnp.float32)
        gw_out = params['gw_out'].astype(jnp.float32)
    else:
        gw_in = jnp.zeros((Din, 1), jnp.float32)
        gw_out = jnp.zeros((Din, 1), jnp.float32)

    # ---- augmented RHS + split-precision bf16 shipping -----------------------
    # X_aug = [x | x@gw_in | x@gw_out | 1]; adj @ X_aug gives Ax, the gate logit and
    # (denominator - 1) in one MXU pass per direction.
    x_flat = x.reshape(B * Np, Din).astype(jnp.float32)
    ones = jnp.ones((B * Np, 1), jnp.float32)
    x_aug = jnp.concatenate([x_flat, x_flat @ gw_in, x_flat @ gw_out, ones], axis=-1)
    Daug = Din + 3
    x_hi = x_aug.astype(jnp.bfloat16)
    x_lo = (x_aug - x_hi.astype(jnp.float32)).astype(jnp.bfloat16)
    adj_bf16 = adj.astype(jnp.bfloat16)              # exact for 0/1 adjacency

    # ---- VMEM-aware batch blocking ------------------------------------------
    try:
        vmem_cap = int(pltpu.get_tpu_info().vmem_capacity_bytes)
    except Exception:
        vmem_cap = 64 * 1024 * 1024                  # conservative (v7x per-TC size)
    bt = _pick_batch_block(B, Np, Din, Dout, Daug, vmem_budget=int(0.6 * vmem_cap))
    grid = B // bt
    rows = bt * Np

    est = _vmem_estimate(bt, Np, Din, Dout, Daug)
    vmem_limit = int(min(max(int(est * 1.25) + (2 << 20), 16 << 20), int(0.85 * vmem_cap)))

    kernel = functools.partial(_gcn_kernel, bt=bt, n=Np, din=Din, dout=Dout,
                               graph_type=graph_type, gcn_gate=gcn_gate)

    out_flat = pl.pallas_call(
        kernel,
        out_shape=jax.ShapeDtypeStruct((B * Np, D2out), jnp.float32),
        grid_spec=pltpu.PrefetchScalarGridSpec(
            num_scalar_prefetch=0,
            grid=(grid,),
            in_specs=[
                pl.BlockSpec((rows, Daug), lambda i: (i, 0)),     # X_aug hi (bf16)
                pl.BlockSpec((rows, Daug), lambda i: (i, 0)),     # X_aug lo (bf16)
                pl.BlockSpec((bt, Np, Np), lambda i: (i, 0, 0)),  # adjacency (bf16)
                pl.BlockSpec((Din, Dout), lambda i: (0, 0)),      # W_in
                pl.BlockSpec((Din, Dout), lambda i: (0, 0)),      # W_out
                pl.BlockSpec((1, Dout), lambda i: (0, 0)),        # fused bias (in half)
                pl.BlockSpec((1, Dout), lambda i: (0, 0)),        # fused bias (out half)
                pl.BlockSpec((1, D2out), lambda i: (0, 0)),       # LN gamma
                pl.BlockSpec((1, D2out), lambda i: (0, 0)),       # LN beta
            ],
            out_specs=pl.BlockSpec((rows, D2out), lambda i: (i, 0)),
            scratch_shapes=[
                pltpu.VMEM((rows, Daug), jnp.float32),            # P_in  = adj   @ X_aug
                pltpu.VMEM((rows, Daug), jnp.float32),            # P_out = adj^T @ X_aug
                pltpu.VMEM((rows, D2out), jnp.float32),           # pre-LN concat slab
            ],
        ),
        compiler_params=pltpu.CompilerParams(
            dimension_semantics=("parallel",),
            vmem_limit_bytes=vmem_limit),
    )(x_hi, x_lo, adj_bf16, w_in, w_out, b_in2, b_out2,
      params['gamma'].astype(jnp.float32), params['beta'].astype(jnp.float32))

    out = out_flat.reshape(B, Np, D2out)
    if Np != N:
        out = out[:, :N, :]
    return out


# ----------------------------- reference -------------------------------------


def _reference(x, adj, params, *, graph_type='dependent', gcn_gate=True):
    adj_t = jnp.swapaxes(adj, -1, -2)
    denom_in = jnp.sum(adj, axis=2, keepdims=True) + 1.0
    denom_out = jnp.sum(adj_t, axis=2, keepdims=True) + 1.0
    ax_in = jnp.einsum('bij,bjd->bid', adj, x)
    ax_out = jnp.einsum('bij,bjd->bid', adj_t, x)
    if gcn_gate:
        ax_in = ax_in * jax.nn.sigmoid(ax_in @ params['gw_in']) + params['gb_in'][0, 0]
        ax_out = ax_out * jax.nn.sigmoid(ax_out @ params['gw_out']) + params['gb_out'][0, 0]
    axw_in = (ax_in @ params['w_in'] + params['b_in']) + (x @ params['w_in'] + params['b_in'])
    axw_out = (ax_out @ params['w_out'] + params['b_out']) + (x @ params['w_out'] + params['b_out'])
    if graph_type == 'dependent':
        axw_in = axw_in / denom_in
        axw_out = axw_out / denom_out
    axw = jnp.concatenate([axw_in, axw_out], axis=-1)
    mean = jnp.mean(axw, axis=-1, keepdims=True)
    var = jnp.mean((axw - mean) ** 2, axis=-1, keepdims=True)
    normed = (axw - mean) * lax.rsqrt(var + _LN_EPS)
    normed = normed * params['gamma'] + params['beta']
    return _gelu_tanh(normed)


if __name__ == "__main__":
    B, N, IN_DIM, OUT_DIM = 2, 8, 16, 32

    key = jax.random.PRNGKey(0)
    keys = jax.random.split(key, 10)

    # Synthetic parameters (shapes per GCNLayer.__init__). Gate biases are set
    # nonzero (the module inits them to zero) to exercise the bias folding.
    params = {
        'w_in': jax.random.normal(keys[0], (IN_DIM, OUT_DIM), jnp.float32) * 0.1,
        'b_in': jax.random.normal(keys[1], (1, OUT_DIM), jnp.float32) * 0.1,
        'w_out': jax.random.normal(keys[2], (IN_DIM, OUT_DIM), jnp.float32) * 0.1,
        'b_out': jax.random.normal(keys[3], (1, OUT_DIM), jnp.float32) * 0.1,
        'gw_in': jax.random.normal(keys[4], (IN_DIM, 1), jnp.float32) * 0.3,
        'gb_in': jnp.full((1, 1), 0.05, jnp.float32),
        'gw_out': jax.random.normal(keys[5], (IN_DIM, 1), jnp.float32) * 0.3,
        'gb_out': jnp.full((1, 1), -0.07, jnp.float32),
        'gamma': jnp.ones((1, 2 * OUT_DIM), jnp.float32) * 1.1,
        'beta': jnp.zeros((1, 2 * OUT_DIM), jnp.float32) + 0.02,
    }

    x = jax.random.normal(keys[6], (B, N, IN_DIM), jnp.float32)
    adj = jax.random.bernoulli(keys[7], 0.3, (B, N, N)).astype(jnp.float32)

    out = gcn_layer_forward(x, adj, params, graph_type='dependent', gcn_gate=True)
    out = jax.block_until_ready(out)

    ref = _reference(x, adj, params, graph_type='dependent', gcn_gate=True)
    np.testing.assert_allclose(np.asarray(out), np.asarray(ref), atol=1e-4, rtol=1e-4)

    print("KERNEL_OK")
</pallas_src>

<mosaic_0001>
module attributes {stable_mosaic.version = 11 : i64} {
  func.func @_gcn_kernel(%arg0: i32, %arg1: memref<8x19xbf16, #tpu.memory_space<vmem>>, %arg2: memref<8x19xbf16, #tpu.memory_space<vmem>>, %arg3: memref<1x8x8xbf16, #tpu.memory_space<vmem>>, %arg4: memref<16x32xf32, #tpu.memory_space<vmem>>, %arg5: memref<16x32xf32, #tpu.memory_space<vmem>>, %arg6: memref<1x32xf32, #tpu.memory_space<vmem>>, %arg7: memref<1x32xf32, #tpu.memory_space<vmem>>, %arg8: memref<1x64xf32, #tpu.memory_space<vmem>>, %arg9: memref<1x64xf32, #tpu.memory_space<vmem>>, %arg10: memref<8x64xf32, #tpu.memory_space<vmem>>, %arg11: memref<8x19xf32, #tpu.memory_space<vmem>>, %arg12: memref<8x19xf32, #tpu.memory_space<vmem>>, %arg13: memref<8x64xf32, #tpu.memory_space<vmem>>) attributes {dimension_semantics = [#tpu.dimension_semantics<parallel>], iteration_bounds = array<i64: 2>, scalar_prefetch = 0 : i64, scratch_operands = 3 : i64, tpu.core_type = #tpu.core_type<tc>, window_params = [{transform_indices = @transform_0, window_bounds = array<i64: 8, 19>}, {transform_indices = @transform_1, window_bounds = array<i64: 8, 19>}, {transform_indices = @transform_2, window_bounds = array<i64: 1, 8, 8>}, {pipeline_mode = #tpu.pipeline_mode<synchronous>, transform_indices = @transform_3, window_bounds = array<i64: 16, 32>}, {pipeline_mode = #tpu.pipeline_mode<synchronous>, transform_indices = @transform_4, window_bounds = array<i64: 16, 32>}, {pipeline_mode = #tpu.pipeline_mode<synchronous>, transform_indices = @transform_5, window_bounds = array<i64: 1, 32>}, {pipeline_mode = #tpu.pipeline_mode<synchronous>, transform_indices = @transform_6, window_bounds = array<i64: 1, 32>}, {pipeline_mode = #tpu.pipeline_mode<synchronous>, transform_indices = @transform_7, window_bounds = array<i64: 1, 64>}, {pipeline_mode = #tpu.pipeline_mode<synchronous>, transform_indices = @transform_8, window_bounds = array<i64: 1, 64>}, {transform_indices = @transform_9, window_bounds = array<i64: 8, 64>}]} {
    %c0 = arith.constant 0 : index
    %c0_0 = arith.constant 0 : index
    %c0_1 = arith.constant 0 : index
    %0 = vector.load %arg3[%c0, %c0_0, %c0_1] : memref<1x8x8xbf16, #tpu.memory_space<vmem>>, vector<1x8x8xbf16>
    %1 = vector.shape_cast %0 : vector<1x8x8xbf16> to vector<8x8xbf16>
    %c0_2 = arith.constant 0 : index
    %c0_3 = arith.constant 0 : index
    %2 = vector.load %arg1[%c0_2, %c0_3] : memref<8x19xbf16, #tpu.memory_space<vmem>>, vector<8x19xbf16>
    %c0_4 = arith.constant 0 : index
    %c0_5 = arith.constant 0 : index
    %3 = vector.load %arg2[%c0_4, %c0_5] : memref<8x19xbf16, #tpu.memory_space<vmem>>, vector<8x19xbf16>
    %cst = arith.constant dense<0.000000e+00> : vector<8x19xf32>
    %4 = tpu.matmul %1, %2, %cst {dimension_numbers = #tpu.dot_dimension_numbers<[1], [0], [0], [1], [0, 0, 1, 1], [], []>} : vector<8x8xbf16>, vector<8x19xbf16>, vector<8x19xf32> -> vector<8x19xf32>
    %cst_6 = arith.constant dense<0.000000e+00> : vector<8x19xf32>
    %5 = tpu.matmul %1, %3, %cst_6 {dimension_numbers = #tpu.dot_dimension_numbers<[1], [0], [0], [1], [0, 0, 1, 1], [], []>} : vector<8x8xbf16>, vector<8x19xbf16>, vector<8x19xf32> -> vector<8x19xf32>
    %6 = arith.addf %4, %5 : vector<8x19xf32>
    %cst_7 = arith.constant dense<0.000000e+00> : vector<8x19xf32>
    %7 = tpu.matmul %1, %2, %cst_7 {dimension_numbers = #tpu.dot_dimension_numbers<[0], [0], [1], [1], [0, 1, 1, 1], [], []>} : vector<8x8xbf16>, vector<8x19xbf16>, vector<8x19xf32> -> vector<8x19xf32>
    %cst_8 = arith.constant dense<0.000000e+00> : vector<8x19xf32>
    %8 = tpu.matmul %1, %3, %cst_8 {dimension_numbers = #tpu.dot_dimension_numbers<[0], [0], [1], [1], [0, 1, 1, 1], [], []>} : vector<8x8xbf16>, vector<8x19xbf16>, vector<8x19xf32> -> vector<8x19xf32>
    %9 = arith.addf %7, %8 : vector<8x19xf32>
    %c0_9 = arith.constant 0 : index
    %c0_10 = arith.constant 0 : index
    %10 = vector.load %arg11[%c0_9, %c0_10] : memref<8x19xf32, #tpu.memory_space<vmem>>, vector<8x19xf32>
    tpu.vector_store %arg11[%c0_9, %c0_10], %6 {strides = array<i32>} : memref<8x19xf32, #tpu.memory_space<vmem>>, vector<8x19xf32>,
    %c0_11 = arith.constant 0 : index
    %c0_12 = arith.constant 0 : index
    %11 = vector.load %arg12[%c0_11, %c0_12] : memref<8x19xf32, #tpu.memory_space<vmem>>, vector<8x19xf32>
    tpu.vector_store %arg12[%c0_11, %c0_12], %9 {strides = array<i32>} : memref<8x19xf32, #tpu.memory_space<vmem>>, vector<8x19xf32>,
    %c0_13 = arith.constant 0 : index
    %c0_14 = arith.constant 0 : index
    %12 = vector.load %arg1[%c0_13, %c0_14] : memref<8x19xbf16, #tpu.memory_space<vmem>>, vector<8x16xbf16>
    %13 = arith.extf %12 : vector<8x16xbf16> to vector<8x16xf32>
    %c0_15 = arith.constant 0 : index
    %c0_16 = arith.constant 0 : index
    %14 = vector.load %arg2[%c0_15, %c0_16] : memref<8x19xbf16, #tpu.memory_space<vmem>>, vector<8x16xbf16>
    %15 = arith.extf %14 : vector<8x16xbf16> to vector<8x16xf32>
    %16 = arith.addf %13, %15 : vector<8x16xf32>
    %c0_17 = arith.constant 0 : index
    %c0_18 = arith.constant 0 : index
    %17 = vector.load %arg11[%c0_17, %c0_18] : memref<8x19xf32, #tpu.memory_space<vmem>>, vector<8x16xf32>
    %c0_19 = arith.constant 0 : index
    %c0_20 = arith.constant 0 : index
    %18 = vector.load %arg12[%c0_19, %c0_20] : memref<8x19xf32, #tpu.memory_space<vmem>>, vector<8x16xf32>
    %c0_21 = arith.constant 0 : index
    %c16 = arith.constant 16 : index
    %19 = vector.load %arg11[%c0_21, %c16] : memref<8x19xf32, #tpu.memory_space<vmem>>, vector<8x1xf32>
    %20 = arith.negf %19 : vector<8x1xf32>
    %21 = math.exp %20 : vector<8x1xf32>
    %cst_22 = arith.constant 1.000000e+00 : f32
    %22 = vector.broadcast %cst_22 : f32 to vector<8x1xf32>
    %23 = arith.addf %22, %21 : vector<8x1xf32>
    %24 = arith.divf %22, %23 : vector<8x1xf32>
    %c0_23 = arith.constant 0 : index
    %c17 = arith.constant 17 : index
    %25 = vector.load %arg12[%c0_23, %c17] : memref<8x19xf32, #tpu.memory_space<vmem>>, vector<8x1xf32>
    %26 = arith.negf %25 : vector<8x1xf32>
    %27 = math.exp %26 : vector<8x1xf32>
    %cst_24 = arith.constant 1.000000e+00 : f32
    %28 = vector.broadcast %cst_24 : f32 to vector<8x1xf32>
    %29 = arith.addf %28, %27 : vector<8x1xf32>
    %30 = arith.divf %28, %29 : vector<8x1xf32>
    %31 = vector.broadcast %24 : vector<8x1xf32> to vector<8x16xf32>
    %32 = arith.mulf %17, %31 : vector<8x16xf32>
    %33 = vector.broadcast %30 : vector<8x1xf32> to vector<8x16xf32>
    %34 = arith.mulf %18, %33 : vector<8x16xf32>
    %35 = arith.addf %32, %16 : vector<8x16xf32>
    %c0_25 = arith.constant 0 : index
    %c0_26 = arith.constant 0 : index
    %36 = vector.load %arg4[%c0_25, %c0_26] : memref<16x32xf32, #tpu.memory_space<vmem>>, vector<16x32xf32>
    %cst_27 = arith.constant dense<0.000000e+00> : vector<8x32xf32>
    %37 = tpu.matmul %35, %36, %cst_27 {dimension_numbers = #tpu.dot_dimension_numbers<[1], [0], [0], [1], [0, 0, 1, 1], [], []>} : vector<8x16xf32>, vector<16x32xf32>, vector<8x32xf32> -> vector<8x32xf32>
    %c0_28 = arith.constant 0 : index
    %c0_29 = arith.constant 0 : index
    %38 = vector.load %arg6[%c0_28, %c0_29] : memref<1x32xf32, #tpu.memory_space<vmem>>, vector<1x32xf32>
    %39 = vector.broadcast %38 : vector<1x32xf32> to vector<8x32xf32>
    %40 = arith.addf %37, %39 : vector<8x32xf32>
    %41 = arith.addf %34, %16 : vector<8x16xf32>
    %c0_30 = arith.constant 0 : index
    %c0_31 = arith.constant 0 : index
    %42 = vector.load %arg5[%c0_30, %c0_31] : memref<16x32xf32, #tpu.memory_space<vmem>>, vector<16x32xf32>
    %cst_32 = arith.constant dense<0.000000e+00> : vector<8x32xf32>
    %43 = tpu.matmul %41, %42, %cst_32 {dimension_numbers = #tpu.dot_dimension_numbers<[1], [0], [0], [1], [0, 0, 1, 1], [], []>} : vector<8x16xf32>, vector<16x32xf32>, vector<8x32xf32> -> vector<8x32xf32>
    %c0_33 = arith.constant 0 : index
    %c0_34 = arith.constant 0 : index
    %44 = vector.load %arg7[%c0_33, %c0_34] : memref<1x32xf32, #tpu.memory_space<vmem>>, vector<1x32xf32>
    %45 = vector.broadcast %44 : vector<1x32xf32> to vector<8x32xf32>
    %46 = arith.addf %43, %45 : vector<8x32xf32>
    %c0_35 = arith.constant 0 : index
    %c18 = arith.constant 18 : index
    %47 = vector.load %arg11[%c0_35, %c18] : memref<8x19xf32, #tpu.memory_space<vmem>>, vector<8x1xf32>
    %cst_36 = arith.constant 1.000000e+00 : f32
    %48 = vector.broadcast %cst_36 : f32 to vector<8x1xf32>
    %49 = arith.addf %47, %48 : vector<8x1xf32>
    %c0_37 = arith.constant 0 : index
    %c18_38 = arith.constant 18 : index
    %50 = vector.load %arg12[%c0_37, %c18_38] : memref<8x19xf32, #tpu.memory_space<vmem>>, vector<8x1xf32>
    %cst_39 = arith.constant 1.000000e+00 : f32
    %51 = vector.broadcast %cst_39 : f32 to vector<8x1xf32>
    %52 = arith.addf %50, %51 : vector<8x1xf32>
    %53 = tpu.reciprocal %49 {approx = true} : vector<8x1xf32> -> vector<8x1xf32>
    %54 = arith.mulf %49, %53 : vector<8x1xf32>
    %cst_40 = arith.constant 2.000000e+00 : f32
    %55 = vector.broadcast %cst_40 : f32 to vector<8x1xf32>
    %56 = arith.subf %55, %54 : vector<8x1xf32>
    %57 = arith.mulf %53, %56 : vector<8x1xf32>
    %58 = vector.broadcast %57 : vector<8x1xf32> to vector<8x32xf32>
    %59 = arith.mulf %40, %58 : vector<8x32xf32>
    %60 = tpu.reciprocal %52 {approx = true} : vector<8x1xf32> -> vector<8x1xf32>
    %61 = arith.mulf %52, %60 : vector<8x1xf32>
    %cst_41 = arith.constant 2.000000e+00 : f32
    %62 = vector.broadcast %cst_41 : f32 to vector<8x1xf32>
    %63 = arith.subf %62, %61 : vector<8x1xf32>
    %64 = arith.mulf %60, %63 : vector<8x1xf32>
    %65 = vector.broadcast %64 : vector<8x1xf32> to vector<8x32xf32>
    %66 = arith.mulf %46, %65 : vector<8x32xf32>
    %c0_42 = arith.constant 0 : index
    %c0_43 = arith.constant 0 : index
    %67 = vector.load %arg13[%c0_42, %c0_43] : memref<8x64xf32, #tpu.memory_space<vmem>>, vector<8x32xf32>
    tpu.vector_store %arg13[%c0_42, %c0_43], %59 {strides = array<i32>} : memref<8x64xf32, #tpu.memory_space<vmem>>, vector<8x32xf32>,
    %c0_44 = arith.constant 0 : index
    %c32 = arith.constant 32 : index
    %68 = vector.load %arg13[%c0_44, %c32] : memref<8x64xf32, #tpu.memory_space<vmem>>, vector<8x32xf32>
    tpu.vector_store %arg13[%c0_44, %c32], %66 {strides = array<i32>} : memref<8x64xf32, #tpu.memory_space<vmem>>, vector<8x32xf32>,
    %c0_45 = arith.constant 0 : index
    %c0_46 = arith.constant 0 : index
    %69 = vector.load %arg13[%c0_45, %c0_46] : memref<8x64xf32, #tpu.memory_space<vmem>>, vector<8x64xf32>
    %cst_47 = arith.constant dense<0.000000e+00> : vector<8xf32>
    %70 = vector.multi_reduction <add>, %69, %cst_47 [1] : vector<8x64xf32> to vector<8xf32>
    %71 = vector.shape_cast %70 : vector<8xf32> to vector<8x1xf32>
    %cst_48 = arith.constant 6.400000e+01 : f32
    %72 = vector.broadcast %cst_48 : f32 to vector<8x1xf32>
    %73 = arith.divf %71, %72 : vector<8x1xf32>
    %74 = vector.broadcast %73 : vector<8x1xf32> to vector<8x64xf32>
    %75 = arith.subf %69, %74 : vector<8x64xf32>
    %76 = arith.mulf %75, %75 : vector<8x64xf32>
    %cst_49 = arith.constant dense<0.000000e+00> : vector<8xf32>
    %77 = vector.multi_reduction <add>, %76, %cst_49 [1] : vector<8x64xf32> to vector<8xf32>
    %78 = vector.shape_cast %77 : vector<8xf32> to vector<8x1xf32>
    %cst_50 = arith.constant 6.400000e+01 : f32
    %79 = vector.broadcast %cst_50 : f32 to vector<8x1xf32>
    %80 = arith.divf %78, %79 : vector<8x1xf32>
    %cst_51 = arith.constant 9.99999974E-6 : f32
    %81 = vector.broadcast %cst_51 : f32 to vector<8x1xf32>
    %82 = arith.addf %80, %81 : vector<8x1xf32>
    %83 = math.rsqrt %82 : vector<8x1xf32>
    %84 = vector.broadcast %83 : vector<8x1xf32> to vector<8x64xf32>
    %85 = arith.mulf %75, %84 : vector<8x64xf32>
    %c0_52 = arith.constant 0 : index
    %c0_53 = arith.constant 0 : index
    %86 = vector.load %arg8[%c0_52, %c0_53] : memref<1x64xf32, #tpu.memory_space<vmem>>, vector<1x64xf32>
    %87 = vector.broadcast %86 : vector<1x64xf32> to vector<8x64xf32>
    %88 = arith.mulf %85, %87 : vector<8x64xf32>
    %c0_54 = arith.constant 0 : index
    %c0_55 = arith.constant 0 : index
    %89 = vector.load %arg9[%c0_54, %c0_55] : memref<1x64xf32, #tpu.memory_space<vmem>>, vector<1x64xf32>
    %90 = vector.broadcast %89 : vector<1x64xf32> to vector<8x64xf32>
    %91 = arith.addf %88, %90 : vector<8x64xf32>
    %cst_56 = arith.constant 5.000000e-01 : f32
    %92 = vector.broadcast %cst_56 : f32 to vector<8x64xf32>
    %93 = arith.mulf %92, %91 : vector<8x64xf32>
    %cst_57 = arith.constant 4.471500e-02 : f32
    %94 = vector.broadcast %cst_57 : f32 to vector<8x64xf32>
    %95 = arith.mulf %94, %91 : vector<8x64xf32>
    %96 = arith.mulf %95, %91 : vector<8x64xf32>
    %97 = arith.mulf %96, %91 : vector<8x64xf32>
    %98 = arith.addf %91, %97 : vector<8x64xf32>
    %cst_58 = arith.constant 0.797884583 : f32
    %99 = vector.broadcast %cst_58 : f32 to vector<8x64xf32>
    %100 = arith.mulf %99, %98 : vector<8x64xf32>
    %101 = math.tanh %100 : vector<8x64xf32>
    %cst_59 = arith.constant 1.000000e+00 : f32
    %102 = vector.broadcast %cst_59 : f32 to vector<8x64xf32>
    %103 = arith.addf %102, %101 : vector<8x64xf32>
    %104 = arith.mulf %93, %103 : vector<8x64xf32>
    %c0_60 = arith.constant 0 : index
    %c0_61 = arith.constant 0 : index
    %105 = vector.load %arg10[%c0_60, %c0_61] : memref<8x64xf32, #tpu.memory_space<vmem>>, vector<8x64xf32>
    tpu.vector_store %arg10[%c0_60, %c0_61], %104 {strides = array<i32>} : memref<8x64xf32, #tpu.memory_space<vmem>>, vector<8x64xf32>,
    return
  }
  func.func @transform_0(%arg0: i32) -> (i32, i32) {
    %c0_i32 = arith.constant 0 : i32
    %c0_i32_0 = arith.constant 0 : i32
    return %arg0, %c0_i32 : i32, i32
  }
  func.func @transform_1(%arg0: i32) -> (i32, i32) {
    %c0_i32 = arith.constant 0 : i32
    %c0_i32_0 = arith.constant 0 : i32
    return %arg0, %c0_i32 : i32, i32
  }
  func.func @transform_2(%arg0: i32) -> (i32, i32, i32) {
    %c0_i32 = arith.constant 0 : i32
    %c0_i32_0 = arith.constant 0 : i32
    %c0_i32_1 = arith.constant 0 : i32
    return %arg0, %c0_i32, %c0_i32_0 : i32, i32, i32
  }
  func.func @transform_3(%arg0: i32) -> (i32, i32) {
    %c0_i32 = arith.constant 0 : i32
    %c0_i32_0 = arith.constant 0 : i32
    %c0_i32_1 = arith.constant 0 : i32
    return %c0_i32, %c0_i32_0 : i32, i32
  }
  func.func @transform_4(%arg0: i32) -> (i32, i32) {
    %c0_i32 = arith.constant 0 : i32
    %c0_i32_0 = arith.constant 0 : i32
    %c0_i32_1 = arith.constant 0 : i32
    return %c0_i32, %c0_i32_0 : i32, i32
  }
  func.func @transform_5(%arg0: i32) -> (i32, i32) {
    %c0_i32 = arith.constant 0 : i32
    %c0_i32_0 = arith.constant 0 : i32
    %c0_i32_1 = arith.constant 0 : i32
    return %c0_i32, %c0_i32_0 : i32, i32
  }
  func.func @transform_6(%arg0: i32) -> (i32, i32) {
    %c0_i32 = arith.constant 0 : i32
    %c0_i32_0 = arith.constant 0 : i32
    %c0_i32_1 = arith.constant 0 : i32
    return %c0_i32, %c0_i32_0 : i32, i32
  }
  func.func @transform_7(%arg0: i32) -> (i32, i32) {
    %c0_i32 = arith.constant 0 : i32
    %c0_i32_0 = arith.constant 0 : i32
    %c0_i32_1 = arith.constant 0 : i32
    return %c0_i32, %c0_i32_0 : i32, i32
  }
  func.func @transform_8(%arg0: i32) -> (i32, i32) {
    %c0_i32 = arith.constant 0 : i32
    %c0_i32_0 = arith.constant 0 : i32
    %c0_i32_1 = arith.constant 0 : i32
    return %c0_i32, %c0_i32_0 : i32, i32
  }
  func.func @transform_9(%arg0: i32) -> (i32, i32) {
    %c0_i32 = arith.constant 0 : i32
    %c0_i32_0 = arith.constant 0 : i32
    return %arg0, %c0_i32 : i32, i32
  }
}

</mosaic_0001>

<bundles_post_ra>
// kernel: tpu_custom_call.1
= control target key start
LH: loop header
LB: loop body
LE: loop exit
PB: predicated region body
PF: predicated region fallthrough
CT: control target
= control target key end

     0   :  { %s1894_s0 = inlined_call_operand.hbm [shape: bf16[16,19], index: 0, kind: input, shape index: {}]   ;;  %s1895_s1 = inlined_call_operand.hbm [shape: bf16[16,19], index: 1, kind: input, shape index: {}]   ;;  %s1896_s2 = inlined_call_operand.hbm [shape: bf16[2,8,8], index: 2, kind: input, shape index: {}]   ;;  %s1897_s3 = inlined_call_operand.hbm [shape: f32[16,32], index: 3, kind: input, shape index: {}]   ;;  %s1898_s4 = inlined_call_operand.hbm [shape: f32[16,32], index: 4, kind: input, shape index: {}]   ;;  %s1899_s5 = inlined_call_operand.vmem [shape: f32[1,32], index: 5, kind: input, shape index: {}]   ;;  %s1900_s6 = inlined_call_operand.vmem [shape: f32[1,32], index: 6, kind: input, shape index: {}]   ;;  %s1901_s7 = inlined_call_operand.vmem [shape: f32[1,64], index: 7, kind: input, shape index: {}]   ;;  %s1902_s8 = inlined_call_operand.vmem [shape: f32[1,64], index: 8, kind: input, shape index: {}]   ;;  %s1903_s9 = inlined_call_operand.hbm [shape: f32[16,64], index: 9, kind: output, shape index: {}]  }
   0x1   :  { %1923 = sst [smem:[#allocation24_spill]] %s1895_s1 }
   0x2   :  { %1924 = sst [smem:[#allocation25_spill]] %s1897_s3 }
   0x3   :  { %14 = vsyncpa [#allocation6], 0 }
   0x4   :  { %16 = vsyncpa [#allocation6 + $0x1], 0 }
   0x5   :  { %17 = vsyncpa [#allocation9], 0 }
   0x6   :  { %19 = vsyncpa [#allocation9 + $0x1], 0 }
   0x7   :  { %20 = vsyncpa [#allocation12], 0 }
   0x8   :  { %21 = vsyncpa [#allocation7], 0 }
   0x9   :  { %23 = vsyncpa [#allocation7 + $0x1], 0  ;;  %s1555_s30 = smov 0   ;;  %s1557_s10 = smov 0  }
   0xa   :  { %s1559_s11 = smov 0   ;;  %s1561_s12 = smov 0  }
   0xb LB: > { %1925 = sst [smem:[#allocation19_spill]] %s1476_s30  ;;  %s1576_s13 = sadd.s32 4294967295, %s1488_s12   ;;  %s1488_s12 = sphi %s1561_s12, %s1959_s12   ;;  %s1484_s11 = sphi %s1559_s11, %s1963_s11   ;;  %s1480_s10 = sphi %s1557_s10, %s1962_s10   ;;  %s1476_s30 = sphi %s1555_s30, %s1961_s30  }
   0xc   : > { %1926 = sst [smem:[#allocation20_spill]] %s1488_s12  ;;  %s1061_s14 = sadd.s32 4294967294, %s1488_s12  }
   0xd   : > { %p49_p0 = scmp.ne.s32.totalorder %s1480_s10, %s1476_s30  ;;  %p1904_p1 = scmp.eq.s32.totalorder %s1576_s13, 0 }
   0xe   : > { %p257_p3 = scmp.eq.s32.totalorder %s1061_s14, 1  ;;  %p1062_p5 = scmp.ge.s32.totalorder %s1488_s12, 1 }
   0xf   : > { %p1585_p4 = por %p1904_p1, %p49_p0  ;;  %p264_p7 = scmp.lt.s32.totalorder %s1488_s12, 3 }
  0x10   : > { %p1590_p6 = por %p257_p3, %p49_p0  ;;  %s1490_s18 = smov [#allocation11]  }
  0x11   : > { %s1927_s15 = scalar_select %p1585_p4, 1, 0 }
  0x12   : > { %s1928_s16 = scalar_select %p1590_p6, 1, 0 }
  0x13   : > { %p1595_p8 = pnand %p1062_p5, %p264_p7  ;;  %s276_s19 = sshll.u32 %s1490_s18, 4  ;;  %s1599_s19 = int_to_ptr.vmem [resolvable:$true] %s276_s19 }
  0x14   : > { %1929 = sst [smem:[#allocation21_spill]] %s1928_s16  ;;  %s1611_s21 = sadd.s32 1, %s1488_s12  }
  0x15   : > { %s1930_s17 = scalar_select %p1595_p8, 1, 0 }
  0x16   : > { %p1177_p9 = pneg %p1595_p8  ;;  %1932 = sst [smem:[#allocation22_spill]] %s1611_s21 }
  0x17   : > { %s36_s22 = sadd.s32 1, %s1484_s11  ;;  %s33_s23 = ssub.s32 %s1488_s12, %s1611_s21 }
  0x18   : > { %p1606_p11 = pnand %p1177_p9, %p1904_p1  ;;  %s1933_s3 = sld [smem:[#allocation25_spill]] }
  0x1a   : > { %s1931_s20 = scalar_select %p1606_p11, 1, 0 }
  0x1b   : > { %p1912_p13 = pneg %p1606_p11 }
  0x1e   : > { %s1268_s26 = scalar_lea.hbm %s1933_s3, 256 }
  0x1f   : > { %p1269_p12 = scmp.ne.s32.totalorder %s1933_s3, %s1268_s26  ;;  %p1275_p5 = scmp.lt.u32.totalorder %s1268_s26, %s1933_s3 }
  0x21   : > { %p1271_p0 = pnand %p1912_p13, %p1269_p12 }
  0x23   : > { %p1272_p3 = pneg %p1271_p0 }
  0x25   : > { %p1277_p7 = pnand %p1275_p5, %p1272_p3 }
  0x27   : > { %1280 = shalt.err (!%p1277_p7)
}
  0x28   : > { %s1281_s18 = scalar_lea.vmem %s1599_s19, 256  ;;  %p1289_p2 = scmp.lt.s32.totalorder %s1599_s19, %s1599_s19 }
  0x29   : > { %p1282_p9 = scmp.ne.s32.totalorder %s1599_s19, %s1281_s18  ;;  %p1290_p12 = scmp.lt.s32.totalorder %s1281_s18, %s1281_s18 }
  0x2b   : > { %p1284_p10 = pnand %p1282_p9, %p1912_p13  ;;  %p1291_p0 = por %p1290_p12, %p1289_p2 }
  0x2d   : > { %p1285_p1 = pneg %p1284_p10 }
  0x2f   : > { %p1292_p6 = pnand %p1291_p0, %p1285_p1 }
  0x31   : > { %1295 = shalt.err (!%p1292_p6)
}
  0x32   : > { %s1907_s24 = smov 128   ;;  %s1908_s25 = smov 8  }
  0x33   : > { %1180 = dma.hbm_to_vmem [thread:$0]  (!%p1606_p11), %s1933_s3, 256, %s1599_s19, [#allocation12], %s1907_s24, %s1907_s24, %s1908_s25  }
  0x34   : > { %p34_p1 = scmp.eq.s32.totalorder %s33_s23, 0  ;;  %p43_p2 = scmp.ne.s32.totalorder %s1484_s11, %s1480_s10 }
  0x35   : > { %p44_p6 = scmp.eq.s32.totalorder %s1488_s12, 0  ;;  %p1200_p10 = scmp.lt.s32.totalorder %s1488_s12, 2 }
  0x36   : > { %s1651_s28 = scalar_select %p34_p1, %s1484_s11, %s36_s22  }
  0x37   : > { %p45_p3 = por %p44_p6, %p43_p2  ;;  %p1935_p5 = scmp.eq.s32.totalorder %s1576_s13, 1 }
  0x38   : > { %1934 = sst [smem:[#allocation23_spill]] %s1651_s28  ;;  %s1909_s14 = sand.u32 1, %s1484_s11  }
  0x39   : > { %p1655_p7 = por %p1935_p5, %p43_p2  ;;  %s1661_s18 = sshll.u32 %s1488_s12, 6 }
  0x3a   : > { %s1665_s21 = sshll.u32 %s1909_s14, 2  ;;  %p1667_p9 = pnand %p1200_p10, %p45_p3 }
  0x3b   : > { %s1936_s29 = scalar_select %p1655_p7, 1, 0 }
  0x3c   : > { %s1937_s19 = scalar_select %p1667_p9, 1, 0 }
  0x3d   : > { %s333_s22 = sand.u32 1, %s1488_s12   ;;  %s1938_s1 = sld [smem:[#allocation24_spill]] }
  0x3e   : > { %s337_s24 = scalar_lea.vmem [#allocation8], %s1665_s21  ;;  %s1681_s14 = scalar_lea.sflag [#allocation9], %s333_s22 }
  0x3f   : > { %s344_s25 = sshll.u32 %s337_s24, 4  ;;  %p1687_p0 = pneg %p1667_p9  ;;  %s1679_s25 = int_to_ptr.vmem [resolvable:$true] %s344_s25 }
  0x41   : > { %s1939_s28 = scalar_select %p1687_p0, 1, 0 }
  0x43   : > { %s1676_s27 = scalar_lea.hbm %s1938_s1, %s1661_s18  ;;  %s1301_s12 = scalar_lea.hbm %s1938_s1, 128 }
  0x44   : > { %s1296_s3 = scalar_lea.hbm %s1676_s27, 64  ;;  %p1302_p6 = scmp.lt.u32.totalorder %s1676_s27, %s1938_s1 }
  0x45   : > { %p1297_p12 = scmp.ne.s32.totalorder %s1676_s27, %s1296_s3  ;;  %p1303_p10 = scmp.lt.u32.totalorder %s1301_s12, %s1296_s3 }
  0x46   : > { %p1305_p5 = scmp.lt.u32.totalorder %s1296_s3, %s1676_s27 }
  0x47   : > { %p1299_p1 = pnand %p1687_p0, %p1297_p12  ;;  %p1304_p3 = por %p1303_p10, %p1302_p6 }
  0x49   : > { %p1300_p2 = pneg %p1299_p1  ;;  %p1306_p13 = por %p1305_p5, %p1304_p3 }
  0x4b   : > { %p1307_p7 = pnand %p1306_p13, %p1300_p2 }
  0x4d   : > { %1310 = shalt.err (!%p1307_p7)
}
  0x4e   : > { %s1311_s22 = scalar_lea.vmem %s1679_s25, 64  ;;  %s1493_s23 = smov [#allocation8]  }
  0x4f   : > { %p1312_p12 = scmp.ne.s32.totalorder %s1679_s25, %s1311_s22  ;;  %s1316_s26 = sshll.u32 %s1493_s23, 4  ;;  %s1317_s26 = int_to_ptr.vmem [resolvable:$false] %s1316_s26 }
  0x50   : > { %s1318_s16 = scalar_lea.vmem %s1317_s26, 128  ;;  %p1319_p8 = scmp.lt.s32.totalorder %s1679_s25, %s1317_s26 }
  0x51   : > { %p1314_p1 = pnand %p1312_p12, %p1687_p0  ;;  %p1320_p11 = scmp.lt.s32.totalorder %s1318_s16, %s1311_s22 }
  0x53   : > { %p1315_p4 = pneg %p1314_p1  ;;  %p1321_p6 = por %p1320_p11, %p1319_p8 }
  0x55   : > { %p1322_p10 = pnand %p1321_p6, %p1315_p4 }
  0x57   : > { %1325 = shalt.err (!%p1322_p10)
}
  0x58   : > { %1190 = dma.hbm_to_vmem [thread:$0]  (!%p1667_p9), %s1676_s27, 64, %s1679_s25, %s1681_s14  }
  0x59   : > { %s1494_s3 = smov [#allocation13]   ;;  %s1326_s23 = scalar_lea.hbm %s1898_s4, 256 }
  0x5a   : > { %s289_s12 = sshll.u32 %s1494_s3, 4  ;;  %p1327_p8 = scmp.ne.s32.totalorder %s1898_s4, %s1326_s23  ;;  %s290_s12 = int_to_ptr.vmem [resolvable:$true] %s289_s12 }
  0x5b   : > { %p1940_p4 = scmp.ne.s32.totalorder %s1931_s20, 0  ;;  %p1333_p2 = scmp.lt.u32.totalorder %s1326_s23, %s1898_s4 }
  0x5d   : > { %p1941_p11 = pneg %p1940_p4 }
  0x5f   : > { %p1329_p13 = pnand %p1327_p8, %p1941_p11 }
  0x61   : > { %p1330_p7 = pneg %p1329_p13 }
  0x63   : > { %p1335_p3 = pnand %p1333_p2, %p1330_p7 }
  0x65   : > { %1338 = shalt.err (!%p1335_p3)
}
  0x66   : > { %s1339_s25 = scalar_lea.vmem %s290_s12, 256  ;;  %p1942_p12 = pmov %p1941_p11 }
  0x67   : > { %p1340_p5 = scmp.ne.s32.totalorder %s290_s12, %s1339_s25  ;;  %p1347_p10 = scmp.lt.s32.totalorder %s290_s12, %s290_s12 }
  0x68   : > { %p1348_p9 = scmp.lt.s32.totalorder %s1339_s25, %s1339_s25 }
  0x69   : > { %p1342_p1 = pnand %p1340_p5, %p1942_p12 }
  0x6a   : > { %p1349_p0 = por %p1348_p9, %p1347_p10 }
  0x6b   : > { %p1343_p6 = pneg %p1342_p1 }
  0x6d   : > { %p1350_p8 = pnand %p1349_p0, %p1343_p6 }
  0x6f   : > { %1353 = shalt.err (!%p1350_p8)
}
  0x70   : > { %s1943_s1 = smov 8   ;;  %s1944_s30 = smov 128  }
  0x71   : > { %1183 = dma.hbm_to_vmem [thread:$0]  (!%p1940_p4), %s1898_s4, 256, %s290_s12, [#allocation12], %s1944_s30, %s1944_s30, %s1943_s1  }
  0x72   : > { %s1738_s26 = scalar_lea.hbm %s1894_s0, %s1661_s18  ;;  %s319_s20 = scalar_lea.vmem [#allocation5], %s1665_s21 }
  0x73   : > { %s326_s22 = sshll.u32 %s319_s20, 4  ;;  %s1945_s16 = sand.u32 1, %s1484_s11   ;;  %s327_s22 = int_to_ptr.vmem [resolvable:$true] %s326_s22 }
  0x74   : > { %s316_s25 = scalar_lea.sflag [#allocation6], %s1945_s16  ;;  %s1354_s27 = scalar_lea.hbm %s1738_s26, 64 }
  0x75   : > { %p1355_p9 = scmp.ne.s32.totalorder %s1738_s26, %s1354_s27  ;;  %p1946_p0 = scmp.ne.s32.totalorder %s1939_s28, 0 }
  0x76   : > { %s1359_s30 = scalar_lea.hbm %s1894_s0, 128  ;;  %p1360_p4 = scmp.lt.u32.totalorder %s1738_s26, %s1894_s0 }
  0x77   : > { %p1357_p11 = pnand %p1355_p9, %p1946_p0  ;;  %p1361_p7 = scmp.lt.u32.totalorder %s1359_s30, %s1354_s27 }
  0x78   : > { %p1363_p3 = scmp.lt.u32.totalorder %s1354_s27, %s1738_s26 }
  0x79   : > { %p1358_p13 = pneg %p1357_p11  ;;  %p1362_p2 = por %p1361_p7, %p1360_p4 }
  0x7b   : > { %p1364_p5 = por %p1363_p3, %p1362_p2 }
  0x7d   : > { %p1365_p12 = pnand %p1364_p5, %p1358_p13 }
  0x7f   : > { %1368 = shalt.err (!%p1365_p12)
}
  0x80   : > { %s1369_s23 = scalar_lea.vmem %s327_s22, 64  ;;  %s1495_s20 = smov [#allocation5]  }
  0x81   : > { %p1370_p1 = scmp.ne.s32.totalorder %s327_s22, %s1369_s23  ;;  %s1374_s16 = sshll.u32 %s1495_s20, 4  ;;  %s1375_s16 = int_to_ptr.vmem [resolvable:$false] %s1374_s16 }
  0x82   : > { %s1376_s12 = scalar_lea.vmem %s1375_s16, 128  ;;  %p1377_p8 = scmp.lt.s32.totalorder %s327_s22, %s1375_s16 }
  0x83   : > { %p1372_p6 = pnand %p1370_p1, %p1946_p0  ;;  %p1378_p9 = scmp.lt.s32.totalorder %s1376_s12, %s1369_s23 }
  0x85   : > { %p1373_p10 = pneg %p1372_p6  ;;  %p1379_p11 = por %p1378_p9, %p1377_p8 }
  0x87   : > { %p1380_p4 = pnand %p1379_p11, %p1373_p10 }
  0x89   : > { %1383 = shalt.err (!%p1380_p4)
}
  0x8a   : > { %p1947_p7 = scmp.ne.s32.totalorder %s1937_s19, 0  ;;  %s1764_s30 = scalar_lea.hbm %s1896_s2, %s1661_s18 }
  0x8b   : > { %s355_s3 = scalar_lea.vmem [#allocation10], %s1665_s21  ;;  %s1384_s23 = scalar_lea.hbm %s1764_s30, 64 }
  0x8c   : > { %1187 = dma.hbm_to_vmem [thread:$0]  (!%p1947_p7), %s1738_s26, 64, %s327_s22, %s316_s25  }
  0x8d   : > { %s362_s24 = sshll.u32 %s355_s3, 4  ;;  %p1385_p13 = scmp.ne.s32.totalorder %s1764_s30, %s1384_s23  ;;  %s363_s24 = int_to_ptr.vmem [resolvable:$true] %s362_s24 }
  0x8e   : > { %s1389_s26 = scalar_lea.hbm %s1896_s2, 128  ;;  %p1390_p5 = scmp.lt.u32.totalorder %s1764_s30, %s1896_s2 }
  0x8f   : > { %p1387_p2 = pnand %p1385_p13, %p1946_p0  ;;  %p1391_p12 = scmp.lt.u32.totalorder %s1389_s26, %s1384_s23 }
  0x90   : > { %p1393_p6 = scmp.lt.u32.totalorder %s1384_s23, %s1764_s30 }
  0x91   : > { %p1388_p3 = pneg %p1387_p2  ;;  %p1392_p1 = por %p1391_p12, %p1390_p5 }
  0x93   : > { %p1394_p10 = por %p1393_p6, %p1392_p1 }
  0x95   : > { %p1395_p8 = pnand %p1394_p10, %p1388_p3 }
  0x97   : > { %1398 = shalt.err (!%p1395_p8)
}
  0x98   : > { %s1399_s21 = scalar_lea.vmem %s363_s24, 64  ;;  %s1496_s18 = smov [#allocation10]  }
  0x99   : > { %p1400_p9 = scmp.ne.s32.totalorder %s363_s24, %s1399_s21  ;;  %s1404_s12 = sshll.u32 %s1496_s18, 4  ;;  %s1405_s12 = int_to_ptr.vmem [resolvable:$false] %s1404_s12 }
  0x9a   : > { %s1406_s27 = scalar_lea.vmem %s1405_s12, 128  ;;  %p1407_p13 = scmp.lt.s32.totalorder %s363_s24, %s1405_s12 }
  0x9b   : > { %p1402_p11 = pnand %p1400_p9, %p1946_p0  ;;  %p1408_p2 = scmp.lt.s32.totalorder %s1406_s27, %s1399_s21 }
  0x9d   : > { %p1403_p4 = pneg %p1402_p11  ;;  %p1409_p7 = por %p1408_p2, %p1407_p13 }
  0x9f   : > { %p1410_p5 = pnand %p1409_p7, %p1403_p4 }
  0xa1   : > { %1413 = shalt.err (!%p1410_p5)
}
  0xa2   : > { %p1948_p12 = scmp.ne.s32.totalorder %s1937_s19, 0  ;;  %p1949_p3 = scmp.ne.s32.totalorder %s1930_s17, 0 }
  0xa3   : > { %s1788_s28 = sand.u32 (!%p1949_p3), 1, %s1480_s10   ;;  %p1950_p0 = scmp.ne.s32.totalorder (!%p1949_p3), %s1927_s15, 0 }
  0xa4   : > { %1193 = dma.hbm_to_vmem [thread:$0]  (!%p1948_p12), %s1764_s30, 64, %s363_s24, %s1681_s14  }
  0xa5   : > { %371 = sbr.rel (%p1949_p3) target bundleno = 1366 (0x556), region = 56  ;;  %s1791_s1 = sshll.u32 (!%p1949_p3), %s1788_s28, 2 }
  0xa6   : > { %s374_s3 = scalar_lea.sflag (!%p1949_p3), [#allocation6], %s1788_s28  ;;  %s377_s23 = scalar_lea.vmem (!%p1949_p3), [#allocation5], %s1791_s1 }
  0xac   : > { %1459 = dma.done.wait (%p1950_p0), %s374_s3, 64  }
  0xad   : > { %1461 = vsyncadd (%p1950_p0), %s374_s3, 4294967232  ;;  %s382_s17 = sand.u32 1, %s1576_s13   ;;  %s386_s19 = scalar_lea.vmem [#allocation8], %s1791_s1 }
  0xae   : > { %s383_s14 = scalar_lea.sflag [#allocation9], %s382_s17 }
  0xaf   : > { %1463 = dma.done.wait (%p1950_p0), %s383_s14, 128  }
  0xb0   : > { %1465 = vsyncadd (%p1950_p0), %s383_s14, 4294967168  ;;  %s395_s30 = scalar_lea.vmem [#allocation10], %s1791_s1  ;;  %p1951_p7 = scmp.eq.s32.totalorder %s1576_s13, 0 }
  0xb2   : > { %1467 = dma.done.wait (%p1951_p7), [#allocation12], 512   ;;  %p1952_p1 = pmov %p1951_p7 }
  0xb3   : > { %v1497_v0 = vmov 0.0   ;;  %vm1498_vm0 = vmmov 0   ;;  %vm456_vm1 = vcmask 1043456   ;;  %v449_v1 = vld [vmem:[%s395_s30] sm:$0xf]  ;;  %vm452_vm2 = vcmask 64512  }
  0xb4   : > { %1469 = vsyncadd (%p1952_p1), [#allocation12], 4294966784  ;;  %1109 = vmatprep.subr.bf16.mxu0 %v1497_v0  ;;  %1111 = vmatprep.mubr.msk.bf16.mxu0 %vm1498_vm0, %v1497_v0  ;;  %v450_v2 = vld [vmem:[%s377_s23] sm:$0xf]  ;;  %v451_v3 = vld [vmem:[%s386_s19] sm:$0xf] }
  0xb5   : > { %1121 = vmatprep.subr.bf16.mxu1 %v1497_v0  ;;  %1123 = vmatprep.mubr.msk.bf16.mxu1 %vm1498_vm0, %v1497_v0  ;;  %v458_v4 = vsel %vm456_vm1, %v451_v3, 0  ;;  %v501_v5 = vsel %vm456_vm1, %v450_v2, 0  ;;  %v1499_v6 = vmov 16   ;;  %vm642_vm3 = vcmask 154624   ;;  %v677_v18 = vld [vmem:[#allocation11] sm:$0xff]  ;;  %v678_v19 = vld [vmem:[#allocation11 + $0x8] sm:$0xff] }
  0xb6   : > { %543 = vxpose.xlu0.c.b16.start.end [1/1] (short) (narrow) %v449_v1, 16  ;;  %1110 = vmatpush3.bf16.msra.mxu0 %v458_v4  ;;  %v1500_v9 = vmov 17   ;;  %v1148_v20 = vpack.c.bf16 %v678_v19, %v677_v18  ;;  %v1501_v21 = vmov 0.0|0.0   ;;  %v1502_v22 = vmov 18   ;;  %v761_v40 = vld [vmem:[#allocation13] sm:$0xff]  ;;  %v762_v41 = vld [vmem:[#allocation13 + $0x8] sm:$0xff] }
  0xb7   : > { %1122 = vmatpush3.bf16.msra.mxu1 %v458_v4  ;;  %1115 = vmatprep.subr.bf16.mxu0 %v1497_v0  ;;  %v1151_v43 = vpack.c.bf16 %v762_v41, %v761_v40  ;;  %v645_v45 = vld [vmem:[%s377_s23] sm:$0xf]  ;;  %v647_v46 = vld [vmem:[%s386_s19] sm:$0xf]  ;;  %vm686_vm4 = vcmask 130048   ;;  %vm865_vm5 = vcmask 261120  }
  0xb8   : > { %1127 = vmatprep.subr.bf16.mxu1 %v1497_v0  ;;  %1249 = vset.pattern.permute.xlu1 %v1499_v6  ;;  %v646_v47 = vunpack.c.l.bf16 %v645_v45  ;;  %v648_v48 = vunpack.c.l.bf16 %v647_v46  ;;  %v1085_v57 = vld [vmem:[%s1899_s5] ss:$0 sm:$0xff]  ;;  %s1503_s26 = smov 32   ;;  %vm871_vm6 = vcmask 523520   ;;  %vm874_vm7 = vcmask 523264   ;;  %s1078_s12 = sshll.u32 %s1788_s28, 3 }
  0xb9   : > { %1112 = vmatmul.mubr.msk.bf16.vlgmr.msra.gmra.mrb[0].mxu0 %vm452_vm2, %v449_v1  ;;  %v1087_v63 = vld [vmem:[%s1900_s6] ss:$0 sm:$0xff]  ;;  %s1092_s27 = sshll.u32 %s1576_s13, 7  ;;  %s447_s1 = scalar_lea.vmem [#allocation14], %s1078_s12 }
  0xba   : > { %1116 = vmatpush3.bf16.msra.mxu0 %v501_v5  ;;  %1117 = vmatprep.mubr.msk.bf16.mxu0 %vm1498_vm0, %v1497_v0  ;;  %v649_v49 = vadd.f32 %v648_v48, %v646_v47  ;;  %v1090_v18 = vld [vmem:[%s1902_s8] ss:$0 sm:$0xff]  ;;  %s929_s3 = sshll.u32 %s447_s1, 4  ;;  %s1849_s14 = scalar_lea.hbm %s1903_s9, %s1092_s27  ;;  %s1851_s3 = int_to_ptr.vmem [resolvable:$true] %s929_s3 }
  0xbb   : > { %1147 = vmatprep.subr.bf16.mxu0 %v1501_v21  ;;  %s916_s19 = scalar_lea.sflag [#allocation7], %s1788_s28  ;;  %s1414_s30 = scalar_lea.vmem %s1851_s3, 128 }
  0xbc   : > { %p1415_p6 = scmp.ne.s32.totalorder %s1851_s3, %s1414_s30  ;;  %p1953_p10 = scmp.ne.s32.totalorder %s1936_s29, 0 }
  0xbd   : > { %s1504_s13 = smov [#allocation14]  }
  0xbe   : > { %p1416_p8 = pnand %p1415_p6, %p1953_p10  ;;  %s1418_s15 = sshll.u32 %s1504_s13, 4  ;;  %s1419_s15 = int_to_ptr.vmem [resolvable:$false] %s1418_s15 }
  0xbf   : > { %1248 = vset.pattern.permute.xlu0 %v1500_v9  ;;  %s1420_s24 = scalar_lea.vmem %s1419_s15, 256  ;;  %p1421_p11 = scmp.lt.s32.totalorder %s1851_s3, %s1419_s15 }
  0xc0   : > { %p1417_p9 = pneg %p1416_p8  ;;  %p1422_p4 = scmp.lt.s32.totalorder %s1420_s24, %s1414_s30 }
  0xc2   : > { %p1423_p13 = por %p1422_p4, %p1421_p11 }
  0xc4   : > { %p1424_p2 = pnand %p1423_p13, %p1417_p9 }
  0xc5   : > { %1118 = vmatmul.mubr.msk.bf16.vlgmr.msra.gmra.mrb[0].mxu0 %vm452_vm2, %v449_v1 }
  0xc6   : > { %1137 = vmatprep.mubr.msk.f32.mxu0 %vm1498_vm0, %v1497_v0  ;;  %1149 = vmatpush3.bf16.msra.mxu0 %v1148_v20 }
 0x11c   : > { %v551_v7 = vpop.trf.xlu0 }
 0x11d   : > { %1124 = vmatmul.mubr.msk.bf16.vlgmr.msra.gmra.mrb[0].mxu1 %vm452_vm2, %v551_v7 }
 0x11e   : > { %1128 = vmatpush3.bf16.msra.mxu1 %v501_v5  ;;  %1129 = vmatprep.mubr.msk.bf16.mxu1 %vm1498_vm0, %v1497_v0 }
 0x11f   : > { %1150 = vmatprep.subr.bf16.mxu1 %v1501_v21 }
 0x129   : > { %1130 = vmatmul.mubr.msk.bf16.vlgmr.msra.gmra.mrb[0].mxu1 %vm452_vm2, %v551_v7 }
 0x12a   : > { %1144 = vmatprep.mubr.msk.f32.mxu1 %vm1498_vm0, %v1497_v0  ;;  %1152 = vmatpush3.bf16.msra.mxu1 %v1151_v43 }
 0x198   : > { %v537_v8 = vpop.f32.mrb[0].mxu0 }
 0x199   : > { %643 = vst.msk [vmem:[#allocation2] sm:$0xff] %vm642_vm3, %v537_v8  ;;  %v1119_v10 = vpop.f32.mrb[1].mxu0 }
 0x19a   : > { %v540_v11 = vpop.f32.mrb[2].mxu0 }
 0x19b   : > { %v1120_v12 = vpop.f32.mrb[3].mxu0 }
 0x1a0   : > { %v650_v13 = vld [vmem:[#allocation2] sm:$0xff] }
 0x1a1   : > { %v1083_v14 = vmul.f32 -1.442695, %v650_v13  ;;  %v843_v27 = vadd.f32 1.0, %v650_v13 }
 0x1a3   : > { %1252 = vpow2.f32 %v1083_v14 }
 0x1ad   : > { %v1253_v15 = vpop.eup %1252 }
 0x1ae   : > { %v655_v16 = vadd.f32 1.0, %v1253_v15 }
 0x1b0   : > { %1254 = vrcp.f32 %v655_v16  ;;  %v1089_v16 = vld [vmem:[%s1901_s7] ss:$0 sm:$0xff] }
 0x1b1   : > { %1256 = vrcp.f32 %v843_v27 }
 0x1ba   : > { %v1255_v17 = vpop.eup %1254 }
 0x1bb   : > { %666 = vperm.xlu1 %1249, %v1255_v17   ;;  %v1257_v31 = vpop.eup %1256 }
 0x1bc   : > { %v846_v33 = vmul.f32 %v1257_v31, %v843_v27 }
 0x1be   : > { %v847_v38 = vsub.f32 2.0, %v846_v33 }
 0x1bf   : > { %1250 = vset.pattern.permute.xlu1 %v1502_v22 }
 0x1c0   : > { %v848_v42 = vmul.f32 %v1257_v31, %v847_v38 }
 0x1fc   : > { %v636_v23 = vpop.f32.mrb[0].mxu1 }
 0x1fd   : > { %644 = vst.msk [vmem:[#allocation3] sm:$0xff] %vm642_vm3, %v636_v23  ;;  %v1131_v24 = vpop.f32.mrb[1].mxu1 }
 0x1fe   : > { %v639_v25 = vpop.f32.mrb[2].mxu1 }
 0x1ff   : > { %v1132_v26 = vpop.f32.mrb[3].mxu1 }
 0x204   : > { %v651_v28 = vld [vmem:[#allocation3] sm:$0xff] }
 0x205   : > { %v1084_v29 = vmul.f32 -1.442695, %v651_v28  ;;  %v844_v30 = vadd.f32 1.0, %v651_v28 }
 0x207   : > { %1258 = vpow2.f32 %v1084_v29 }
 0x208   : > { %1260 = vrcp.f32 %v844_v30 }
 0x211   : > { %v1259_v32 = vpop.eup %1258 }
 0x212   : > { %v1261_v34 = vpop.eup %1260  ;;  %v661_v35 = vadd.f32 1.0, %v1259_v32 }
 0x213   : > { %v856_v36 = vmul.f32 %v1261_v34, %v844_v30 }
 0x214   : > { %1262 = vrcp.f32 %v661_v35 }
 0x215   : > { %v857_v37 = vsub.f32 2.0, %v856_v36 }
 0x217   : > { %v858_v39 = vmul.f32 %v1261_v34, %v857_v37 }
 0x219   : > { %861 = vperm.xlu1 %1250, %v858_v39  }
 0x21d   : > { %851 = vperm.xlu1 %1250, %v848_v42  }
 0x21e   : > { %v1263_v44 = vpop.eup %1262 }
 0x21f   : > { %672 = vperm.xlu0 %1248, %v1263_v44  }
 0x223   : > { %1251 = vset.pattern.permute.xlu0 %v1502_v22 }
 0x23a   : > { %v667_v50 = vpop.permute.xlu1 %666 }
 0x23b   : > { %v669_v51 = vmul.f32 %v667_v50, %v650_v13 }
 0x23d   : > { %v676_v52 = vadd.f32 %v669_v51, %v649_v49 }
 0x23f   : > { %1138 = vmatmul.mubr.msk.f32.vlgmr.msra.gmra.mrb[4].mxu0 %vm686_vm4, %v676_v52 }
 0x298   : > { %v862_v56 = vpop.permute.xlu1 %861 }
 0x29c   : > { %v852_v61 = vpop.permute.xlu1 %851 }
 0x29e   : > { %v673_v53 = vpop.permute.xlu0 %672 }
 0x29f   : > { %v675_v54 = vmul.f32 %v673_v53, %v651_v28 }
 0x2a1   : > { %v760_v55 = vadd.f32 %v675_v54, %v649_v49 }
 0x2a3   : > { %1145 = vmatmul.mubr.msk.f32.vlgmr.msra.gmra.mrb[4].mxu1 %vm686_vm4, %v760_v55 }
 0x312   : > { %v756_v58 = vpop.f32.mrb[4].mxu0 }
 0x313   : > { %v757_v59 = vadd.f32 %v1085_v57, %v756_v58  ;;  %v1139_v60 = vpop.f32.mrb[5].mxu0 }
 0x315   : > { %v854_v62 = vmul.f32 %v852_v61, %v757_v59 }
 0x317   : > { %866 = vst.msk [vmem:[#allocation4] sm:$0xff] %vm865_vm5, %v854_v62 }
 0x376   : > { %v839_v0 = vpop.f32.mrb[4].mxu1 }
 0x377   : > { %v840_v1 = vadd.f32 %v1087_v63, %v839_v0  ;;  %v1146_v2 = vpop.f32.mrb[5].mxu1 }
 0x379   : > { %v864_v3 = vmul.f32 %v862_v56, %v840_v1 }
 0x37b   : > { %868 = vrot.lane.b32.xlu1 %v864_v3, %s1503_s26 }
 0x3ed   : > { %v869_v4 = vpop.permute.xlu1 %868 }
 0x3ee   : > { %872 = vst.msk [vmem:[#allocation4] sm:$0xff] %vm871_vm6, %v869_v4 }
 0x3f5   : > { %v873_v5 = vld [vmem:[#allocation4] sm:$0xff] }
 0x3f6   : > { %v875_v6 = vsel %vm874_vm7, %v873_v5, 0.0 }
 0x3f7   : > { %876 = vadd.xlane.f32.xlu0 %v875_v6 }
 0x484   : > { %v877_v7 = vpop.xlane.xlu0 %876 }
 0x485   : > { %v879_v8 = vmul.f32 0.015625, %v877_v7 }
 0x487   : > { %v880_v9 = vsub.f32 %v873_v5, %v879_v8 }
 0x489   : > { %v881_v10 = vmul.f32 %v880_v9, %v880_v9 }
 0x48b   : > { %v882_v11 = vsel %vm874_vm7, %v881_v10, 0.0 }
 0x48c   : > { %883 = vadd.xlane.f32.xlu1 %v882_v11 }
 0x519   : > { %v884_v12 = vpop.xlane.xlu1 %883 }
 0x51a   : > { %v885_v13 = vmul.f32 0.015625, %v884_v12 }
 0x51c   : > { %v886_v14 = vadd.f32 1e-05, %v885_v13 }
 0x51e   : > { %1264 = vrsqrt.f32 %v886_v14 }
 0x528   : > { %v1265_v15 = vpop.eup %1264 }
 0x529   : > { %v888_v17 = vmul.f32 %v1265_v15, %v880_v9 }
 0x52b   : > { %v896_v19 = vmul.f32 %v1089_v16, %v888_v17 }
 0x52d   : > { %v904_v20 = vadd.f32 %v1090_v18, %v896_v19 }
 0x52f   : > { %v906_v21 = vmul.f32 0.044715, %v904_v20  ;;  %v905_v27 = vmul.f32 0.5, %v904_v20 }
 0x531   : > { %v907_v22 = vmul.f32 %v906_v21, %v904_v20 }
 0x533   : > { %v908_v23 = vmul.f32 %v907_v22, %v904_v20 }
 0x535   : > { %v909_v24 = vadd.f32 %v908_v23, %v904_v20 }
 0x537   : > { %v910_v25 = vmul.f32 0.7978846, %v909_v24 }
 0x539   : > { %1266 = vtanh.f32 %v910_v25 }
 0x543   : > { %v1267_v26 = vpop.eup %1266 }
 0x544   : > { %v912_v28 = vadd.f32 1.0, %v1267_v26 }
 0x546   : > { %v913_v29 = vmul.f32 %v912_v28, %v905_v27 }
 0x548   : > { %914 = vst.msk [vmem:[%s447_s1] sm:$0xff] %vm874_vm7, %v913_v29 }
 0x549   : > { %1427 = shalt.err (!%p1424_p2)
}
 0x54a   : > { %s1428_s28 = scalar_lea.hbm %s1849_s14, 128  ;;  %s1432_s26 = scalar_lea.hbm %s1903_s9, 256 }
 0x54b   : > { %p1429_p5 = scmp.ne.s32.totalorder %s1849_s14, %s1428_s28  ;;  %p1433_p0 = scmp.lt.u32.totalorder %s1849_s14, %s1903_s9 }
 0x54c   : > { %p1434_p7 = scmp.lt.u32.totalorder %s1432_s26, %s1428_s28  ;;  %p1436_p6 = scmp.lt.u32.totalorder %s1428_s28, %s1849_s14 }
 0x54d   : > { %p1430_p12 = pnand %p1429_p5, %p1953_p10 }
 0x54e   : > { %p1435_p1 = por %p1434_p7, %p1433_p0 }
 0x54f   : > { %p1431_p3 = pneg %p1430_p12 }
 0x550   : > { %p1437_p8 = por %p1436_p6, %p1435_p1 }
 0x552   : > { %p1438_p9 = pnand %p1437_p8, %p1431_p3 }
 0x554   : > { %1441 = shalt.err (!%p1438_p9)
}
 0x555   : > { %1175 = dma.vmem_to_hbm [thread:$0]  (%p1953_p10), %s1851_s3, 128, %s1849_s14, %s916_s19  }
 0x556 PF: > { %s1954_s21 = sld [smem:[#allocation19_spill]]  ;;  %s1955_s18 = sld [smem:[#allocation21_spill]] }
 0x557   : > { %s1956_s12 = sld [smem:[#allocation20_spill]] }
 0x55c   : > { %s941_s27 = sand.u32 1, %s1954_s21   ;;  %p1957_p11 = scmp.ne.s32.totalorder %s1955_s18, 0 }
 0x55d   : > { %p1958_p4 = scmp.ge.s32.totalorder %s1956_s12, 2  ;;  %s942_s1 = scalar_lea.sflag [#allocation7], %s941_s27 }
 0x55f   : > { %p1195_p13 = pnand %p1958_p4, %p1957_p11 }
 0x561   : > { %1471 = dma.done.wait (!%p1195_p13), %s942_s1, 128  }
 0x562   : > { %1473 = vsyncadd (!%p1195_p13), %s942_s1, 4294967168  ;;  %s1959_s12 = sld [smem:[#allocation22_spill]]  ;;  %s1960_s23 = sld [smem:[#allocation23_spill]] }
 0x563   : > { %s1961_s30 = smov %s1480_s10  ;;  %s1962_s10 = smov %s1484_s11 }
 0x568   : > { %p26_p2 = scmp.ge.s32.totalorder %s1959_s12, 4   ;;  %s1963_s11 = smov %s1960_s23 }
 0x56a   :  { %28 = sbr.rel (!%p26_p2) target bundleno = 11 (0xb), region = 133 }
 0x571   :  { %947 = vsyncpa [#allocation6], 1 }
 0x572   :  { %949 = vsyncpa [#allocation6 + $0x1], 1 }
 0x573   :  { %950 = vsyncpa [#allocation9], 1 }
 0x574   :  { %952 = vsyncpa [#allocation9 + $0x1], 1 }
 0x575   :  { %953 = vsyncpa [#allocation12], 1 }
 0x576   :  { %954 = vsyncpa [#allocation7], 1 }
 0x577   :  { %956 = vsyncpa [#allocation7 + $0x1], 1 }

</bundles_post_ra>
